<compile_context>
chip_gen: v5e
topology: v5e:2x2
jax: 0.10.0
libtpu: 0.0.40
codegen_flags: <defaults>
</compile_context>

<pallas_src>
import math

import jax
import jax.numpy as jnp
from jax.experimental import pallas as pl
from jax.experimental.pallas import tpu as pltpu


def _make_kernel(beta):
    beta = float(beta)

    def kernel(slope_ref, x_ref, o_ref):
        # slope_ref: (1, W) -> broadcasts over the row (sublane) axis.
        x = x_ref[...].astype(jnp.float32)
        s = slope_ref[...].astype(jnp.float32)
        y = beta * jax.nn.sigmoid(s * x)
        o_ref[...] = y.astype(o_ref.dtype)

    return kernel


def _choose_fold(F):
    """Pick k so W = k*F is a multiple of 128, targeting W ~ 512 lanes."""
    w_base = math.lcm(F, 128)
    if w_base > 2048:
        return 1  # lcm too large; keep natural width (full-extent last dim).
    k_base = w_base // F
    mult = max(1, 512 // w_base)
    return k_base * mult


def learnable_sigmoid(x, slope, beta=1.2):
    """x: (..., F) array, slope: (F,) parameter. Returns beta*sigmoid(slope*x)."""
    F = slope.shape[0]
    assert x.shape[-1] == F, "last dim of x must equal in_features"

    lead = x.shape[:-1]
    rows = math.prod(lead) if lead else 1

    dtype = x.dtype
    itemsize = jnp.dtype(dtype).itemsize
    sublane = max(8, 32 // itemsize)  # 8 for f32, 16 for bf16, 32 for int8

    k = _choose_fold(F)
    W = k * F
    folded_rows = pl.cdiv(rows, k)

    # Row tile: large (amortize ~0.35us/step), sublane-aligned, bounded so the
    # double-buffered in+out tiles stay a few MiB (safe across v5e/v6e/v7x).
    vmem_budget_per_buf = 2 * 1024 * 1024  # bytes per single buffer
    max_tile_r = max(sublane,
                     (vmem_budget_per_buf // (W * itemsize)) // sublane * sublane)
    tile_r = min(2048, max_tile_r, pl.cdiv(folded_rows, sublane) * sublane)
    tile_r = max(tile_r, sublane)

    grid_r = pl.cdiv(folded_rows, tile_r)
    padded_folded_rows = grid_r * tile_r
    padded_rows = padded_folded_rows * k

    x2d = x.reshape(rows, F)
    if padded_rows != rows:
        x2d = jnp.pad(x2d, ((0, padded_rows - rows), (0, 0)))
    xw = x2d.reshape(padded_folded_rows, W)
    # Slope replicated across the fold so the broadcast stays correct per lane group.
    slope_w = jnp.tile(slope, k).reshape(1, W)

    out = pl.pallas_call(
        _make_kernel(beta),
        out_shape=jax.ShapeDtypeStruct((padded_folded_rows, W), dtype),
        grid=(grid_r,),
        in_specs=[
            pl.BlockSpec((1, W), lambda i: (0, 0)),        # slope: DMA'd once, resident
            pl.BlockSpec((tile_r, W), lambda i: (i, 0)),   # x: row-tiled, pipelined
        ],
        out_specs=pl.BlockSpec((tile_r, W), lambda i: (i, 0)),
        compiler_params=pltpu.CompilerParams(
            dimension_semantics=("parallel",)),
    )(slope_w, xw)

    out = out.reshape(padded_rows, F)[:rows]
    return out.reshape(*lead, F)


if __name__ == "__main__":
    key = jax.random.PRNGKey(0)
    batch, seq, in_features = 2, 8, 32
    beta = 1.2

    # Deterministic parameter init matching nn.Parameter(torch.ones(in_features))
    slope = jnp.ones((in_features,), dtype=jnp.float32)

    x = jax.random.normal(key, (batch, seq, in_features), dtype=jnp.float32)

    y = learnable_sigmoid(x, slope, beta=beta)
    y = jax.block_until_ready(y)

    # Reference check in plain JAX
    y_ref = beta * jax.nn.sigmoid(slope * x)
    assert y.shape == x.shape
    assert jnp.allclose(y, y_ref, atol=1e-6, rtol=1e-6)

    print("KERNEL_OK")
</pallas_src>

<mosaic_0001>
module attributes {stable_mosaic.version = 11 : i64} {
  func.func @kernel(%arg0: i32, %arg1: memref<1x512xf32, #tpu.memory_space<vmem>>, %arg2: memref<8x512xf32, #tpu.memory_space<vmem>>, %arg3: memref<8x512xf32, #tpu.memory_space<vmem>>) attributes {dimension_semantics = [#tpu.dimension_semantics<parallel>], iteration_bounds = array<i64: 1>, scalar_prefetch = 0 : i64, scratch_operands = 0 : i64, tpu.core_type = #tpu.core_type<tc>, window_params = [{pipeline_mode = #tpu.pipeline_mode<synchronous>, transform_indices = @transform_0, window_bounds = array<i64: 1, 512>}, {transform_indices = @transform_1, window_bounds = array<i64: 8, 512>}, {transform_indices = @transform_2, window_bounds = array<i64: 8, 512>}]} {
    %c0 = arith.constant 0 : index
    %c0_0 = arith.constant 0 : index
    %0 = vector.load %arg2[%c0, %c0_0] : memref<8x512xf32, #tpu.memory_space<vmem>>, vector<8x512xf32>
    %c0_1 = arith.constant 0 : index
    %c0_2 = arith.constant 0 : index
    %1 = vector.load %arg1[%c0_1, %c0_2] : memref<1x512xf32, #tpu.memory_space<vmem>>, vector<1x512xf32>
    %2 = vector.broadcast %1 : vector<1x512xf32> to vector<8x512xf32>
    %3 = arith.mulf %2, %0 : vector<8x512xf32>
    %4 = arith.negf %3 : vector<8x512xf32>
    %5 = math.exp %4 : vector<8x512xf32>
    %cst = arith.constant 1.000000e+00 : f32
    %6 = vector.broadcast %cst : f32 to vector<8x512xf32>
    %7 = arith.addf %6, %5 : vector<8x512xf32>
    %8 = arith.divf %6, %7 : vector<8x512xf32>
    %cst_3 = arith.constant 1.200000e+00 : f32
    %9 = vector.broadcast %cst_3 : f32 to vector<8x512xf32>
    %10 = arith.mulf %9, %8 : vector<8x512xf32>
    %c0_4 = arith.constant 0 : index
    %c0_5 = arith.constant 0 : index
    %11 = vector.load %arg3[%c0_4, %c0_5] : memref<8x512xf32, #tpu.memory_space<vmem>>, vector<8x512xf32>
    tpu.vector_store %arg3[%c0_4, %c0_5], %10 {strides = array<i32>} : memref<8x512xf32, #tpu.memory_space<vmem>>, vector<8x512xf32>,
    return
  }
  func.func @transform_0(%arg0: i32) -> (i32, i32) {
    %c0_i32 = arith.constant 0 : i32
    %c0_i32_0 = arith.constant 0 : i32
    %c0_i32_1 = arith.constant 0 : i32
    return %c0_i32, %c0_i32_0 : i32, i32
  }
  func.func @transform_1(%arg0: i32) -> (i32, i32) {
    %c0_i32 = arith.constant 0 : i32
    %c0_i32_0 = arith.constant 0 : i32
    return %arg0, %c0_i32 : i32, i32
  }
  func.func @transform_2(%arg0: i32) -> (i32, i32) {
    %c0_i32 = arith.constant 0 : i32
    %c0_i32_0 = arith.constant 0 : i32
    return %arg0, %c0_i32 : i32, i32
  }
}

</mosaic_0001>

<bundles_post_ra>
// kernel: tpu_custom_call.1
= control target key start
LH: loop header
LB: loop body
LE: loop exit
PB: predicated region body
PF: predicated region fallthrough
CT: control target
= control target key end

     0   :  { %7 = vsyncpa [#allocation3], 0  ;;  %s328_s0 = inlined_call_operand.hbm [shape: f32[1,512], index: 0, kind: input, shape index: {}]   ;;  %s329_s1 = inlined_call_operand.hbm [shape: f32[8,512], index: 1, kind: input, shape index: {}]   ;;  %s330_s2 = inlined_call_operand.hbm [shape: f32[8,512], index: 2, kind: output, shape index: {}]  }
   0x1   :  { %8 = vsyncpa [#allocation6], 0 }
   0x2   :  { %9 = vsyncpa [#allocation4], 0  ;;  %s15_s11 = sshll.u32 %s328_s0, 4  ;;  %s261_s12 = smov [#allocation2]   ;;  %s16_s11 = int_to_ptr.hbm [resolvable:$true] %s15_s11 }
   0x3   :  { %s17_s13 = sshll.u32 %s261_s12, 4  ;;  %s26_s16 = sshll.u32 %s329_s1, 4  ;;  %s18_s13 = int_to_ptr.vmem [resolvable:$true] %s17_s13  ;;  %s27_s16 = int_to_ptr.hbm [resolvable:$true] %s26_s16 }
   0x4   :  { %20 = dma.hbm_to_vmem [thread:$0]  %s16_s11, 64, %s18_s13, [#allocation3]  }
   0x5   :  { %s262_s17 = smov [#allocation5]  }
   0x6   :  { %s28_s18 = sshll.u32 %s262_s17, 4  ;;  %s29_s18 = int_to_ptr.vmem [resolvable:$true] %s28_s18 }
   0x7   :  { %31 = dma.hbm_to_vmem [thread:$0]  %s27_s16, 512, %s29_s18, [#allocation6]  }
   0x8   :  { %255 = dma.done.wait [#allocation3], 64  }
   0x9   :  { %256 = vsyncadd [#allocation3], 4294967232 }
   0xa   :  { %257 = dma.done.wait [#allocation6], 512  }
   0xb   :  { %258 = vsyncadd [#allocation6], 4294966784  ;;  %v40_v0 = vld [vmem:[#allocation5] sm:$0xff]  ;;  %v44_v1 = vld [vmem:[#allocation2] sm:$0xf]  ;;  %s263_s0 = smov [#allocation7]  }
   0xc   :  { %v41_v2 = vld [vmem:[#allocation5 + $0x8] sm:$0xff]  ;;  %v46_v3 = vperm.slane %v44_v1, 0  ;;  %v47_v4 = vperm.slane %v44_v1, 1  ;;  %v42_v5 = vld [vmem:[#allocation5 + $0x10] sm:$0xff]  ;;  %v48_v6 = vperm.slane %v44_v1, 2  ;;  %v43_v7 = vld [vmem:[#allocation5 + $0x18] sm:$0xff] }
   0xd   :  { %v49_v8 = vperm.slane %v44_v1, 3  ;;  %s147_s1 = sshll.u32 %s263_s0, 4  ;;  %s149_s21 = sshll.u32 %s330_s2, 4  ;;  %s148_s1 = int_to_ptr.vmem [resolvable:$true] %s147_s1  ;;  %s150_s21 = int_to_ptr.hbm [resolvable:$true] %s149_s21 }
   0xe   :  { %v54_v9 = vmul.f32 %v46_v3, %v40_v0  ;;  %v55_v10 = vmul.f32 %v47_v4, %v41_v2  ;;  %v56_v11 = vmul.f32 %v48_v6, %v42_v5 }
   0xf   :  { %v57_v12 = vmul.f32 %v49_v8, %v43_v7 }
  0x10   :  { %v160_v13 = vmul.f32 -1.442695, %v54_v9  ;;  %v161_v14 = vmul.f32 -1.442695, %v55_v10  ;;  %v162_v15 = vmul.f32 -1.442695, %v56_v11 }
  0x11   :  { %v163_v16 = vmul.f32 -1.442695, %v57_v12 }
  0x12   :  { %167 = vpow2.f32 %v160_v13 }
  0x13   :  { %169 = vpow2.f32 %v161_v14 }
  0x14   :  { %171 = vpow2.f32 %v162_v15 }
  0x15   :  { %173 = vpow2.f32 %v163_v16 }
  0x18   :  { %v168_v17 = vpop.eup %167 }
  0x19   :  { %v170_v18 = vpop.eup %169  ;;  %v70_v19 = vadd.f32 1.0, %v168_v17 }
  0x1a   :  { %v172_v20 = vpop.eup %171  ;;  %v71_v21 = vadd.f32 1.0, %v170_v18 }
  0x1b   :  { %v174_v22 = vpop.eup %173  ;;  %175 = vrcp.f32 %v70_v19  ;;  %v72_v23 = vadd.f32 1.0, %v172_v20  ;;  %v83_v25 = vand.u32 2147483647, %v70_v19  ;;  %v85_v26 = vand.u32 2147483648, %v70_v19 }
  0x1c   :  { %177 = vrcp.f32 %v71_v21  ;;  %v73_v24 = vadd.f32 1.0, %v174_v22  ;;  %v98_v28 = vand.u32 2147483647, %v71_v21  ;;  %v100_v29 = vand.u32 2147483648, %v71_v21 }
  0x1d   :  { %179 = vrcp.f32 %v72_v23  ;;  %vm79_vm0 = vweird.f32 %v70_v19  ;;  %vm94_vm1 = vweird.f32 %v71_v21  ;;  %vm285_vm3 = vcmp.eq.f32.partialorder %v83_v25, 8.507059e+37 }
  0x1e   :  { %181 = vrcp.f32 %v73_v24  ;;  %v86_v35 = vor.u32 1.1754944e-38, %v85_v26  ;;  %vm289_vm5 = vcmp.eq.f32.partialorder %v98_v28, 8.507059e+37  ;;  %v101_v39 = vor.u32 1.1754944e-38, %v100_v29 }
  0x1f   :  { %vm109_vm6 = vweird.f32 %v72_v23  ;;  %v113_v43 = vand.u32 2147483647, %v72_v23  ;;  %v115_v46 = vand.u32 2147483648, %v72_v23  ;;  %vm124_vm8 = vweird.f32 %v73_v24 }
  0x20   :  { %v130_v51 = vand.u32 2147483648, %v73_v24  ;;  %v128_v54 = vand.u32 2147483647, %v73_v24 }
  0x21   :  { %v176_v27 = vpop.eup %175  ;;  %vm305_vm12 = vcmp.eq.f32.partialorder %v113_v43, 8.507059e+37  ;;  %v116_v61 = vor.u32 1.1754944e-38, %v115_v46 }
  0x22   :  { %v178_v30 = vpop.eup %177  ;;  %v75_v31 = vmul.f32 %v176_v27, %v70_v19  ;;  %vm80_vm2 = vweird.f32 %v176_v27  ;;  %v131_v2 = vor.u32 1.1754944e-38, %v130_v51  ;;  %vm129_vm15 = vcmp.eq.f32.partialorder %v128_v54, 8.507059e+37 }
  0x23   :  { %v90_v32 = vmul.f32 %v178_v30, %v71_v21  ;;  %v180_v36 = vpop.eup %179  ;;  %vm95_vm4 = vweird.f32 %v178_v30  ;;  %vm294_vm7 = vmor %vm79_vm0, %vm80_vm2 }
  0x24   :  { %v76_v33 = vsub.f32 1.0, %v75_v31  ;;  %v182_v40 = vpop.eup %181  ;;  %v105_v42 = vmul.f32 %v180_v36, %v72_v23  ;;  %vm299_vm9 = vmor %vm94_vm1, %vm95_vm4  ;;  %vm110_vm10 = vweird.f32 %v180_v36 }
  0x25   :  { %v91_v37 = vsub.f32 1.0, %v90_v32  ;;  %v120_v47 = vmul.f32 %v182_v40, %v73_v24  ;;  %vm125_vm11 = vweird.f32 %v182_v40  ;;  %vm314_vm13 = vmor %vm109_vm6, %vm110_vm10 }
  0x26   :  { %v77_v41 = vmul.f32 %v176_v27, %v76_v33  ;;  %v106_v50 = vsub.f32 1.0, %v105_v42  ;;  %vm126_vm14 = vmor %vm124_vm8, %vm125_vm11 }
  0x27   :  { %v92_v45 = vmul.f32 %v178_v30, %v91_v37  ;;  %v121_v53 = vsub.f32 1.0, %v120_v47 }
  0x28   :  { %v78_v48 = vadd.f32 %v176_v27, %v77_v41  ;;  %v107_v56 = vmul.f32 %v180_v36, %v106_v50 }
  0x29   :  { %v93_v52 = vadd.f32 %v178_v30, %v92_v45  ;;  %v122_v62 = vmul.f32 %v182_v40, %v121_v53 }
  0x2a   :  { %v82_v55 = vsel %vm294_vm7, %v176_v27, %v78_v48  ;;  %v108_v1 = vadd.f32 %v180_v36, %v107_v56 }
  0x2b   :  { %v87_v58 = vsel %vm285_vm3, %v86_v35, %v82_v55  ;;  %v97_v59 = vsel %vm299_vm9, %v178_v30, %v93_v52  ;;  %v123_v4 = vadd.f32 %v182_v40, %v122_v62 }
  0x2c   :  { %v134_v63 = vmul.f32 1.2, %v87_v58  ;;  %v102_v0 = vsel %vm289_vm5, %v101_v39, %v97_v59  ;;  %v112_v5 = vsel %vm314_vm13, %v180_v36, %v108_v1 }
  0x2d   :  { %v135_v3 = vmul.f32 1.2, %v102_v0  ;;  %v117_v6 = vsel %vm305_vm12, %v116_v61, %v112_v5  ;;  %v127_v7 = vsel %vm126_vm14, %v182_v40, %v123_v4 }
  0x2e   :  { %138 = vst [vmem:[#allocation7] sm:$0xff] %v134_v63  ;;  %v136_v8 = vmul.f32 1.2, %v117_v6  ;;  %v132_v9 = vsel %vm129_vm15, %v131_v2, %v127_v7 }
  0x2f   :  { %139 = vst [vmem:[#allocation7 + $0x8] sm:$0xff] %v135_v3  ;;  %v137_v10 = vmul.f32 1.2, %v132_v9 }
  0x30   :  { %140 = vst [vmem:[#allocation7 + $0x10] sm:$0xff] %v136_v8 }
  0x31   :  { %141 = vst [vmem:[#allocation7 + $0x18] sm:$0xff] %v137_v10 }
  0x32   :  { %152 = dma.vmem_to_hbm [thread:$0]  %s148_s1, 512, %s150_s21, [#allocation4]  }
  0x33   :  { %259 = dma.done.wait [#allocation4], 512  }
  0x34   :  { %260 = vsyncadd [#allocation4], 4294966784 }
  0x35   :  { %157 = vsyncpa [#allocation3], 1 }
  0x36   :  { %158 = vsyncpa [#allocation6], 1 }
  0x37   :  { %159 = vsyncpa [#allocation4], 1 }

</bundles_post_ra>
